<compile_context>
chip_gen: v7x
topology: tpu7x:2x2x1
jax: 0.10.0
libtpu: 0.0.40
codegen_flags: <defaults>
</compile_context>

<pallas_src>
import functools

import jax
import jax.numpy as jnp
from jax import lax
from jax.experimental import pallas as pl
from jax.experimental.pallas import tpu as pltpu

_MB = 1024 * 1024


def _round_up(v, m):
    return ((v + m - 1) // m) * m


# ----------------------------------------------------------------------------
# Stage 1: AllAttLayer -> proto vector only (flash-style streamed scores)
# ----------------------------------------------------------------------------
def _allatt_proto_kernel(x_ref, wqT_ref, bq_ref, wkT_ref, bk_ref,
                         w6T_ref, b6_ref, proto_ref, k_scr,
                         *, group_b, hw):
    """One batch half per grid step.

    x_ref     : (M, C)  bf16 activations, M = group_b*HW (flattened outside)
    wqT/wkT   : (C, C)  bf16, pre-transposed; wqT pre-scaled by scale/group_b
    bq/bk/b6  : (1, C)  fp32 (bq pre-scaled like wqT)
    w6T       : (C, C)  fp32
    proto_ref : (1, C)  fp32 output
    k_scr     : (M, C)  bf16 scratch (key features, VMEM resident)
    """
    c = x_ref.shape[-1]
    m = group_b * hw
    unroll = group_b <= 8   # full unroll for small halves, true loop otherwise

    # ---- pass 1: K = x @ Wk^T + bk, kept resident as bf16 only -------------
    def k_body(b, carry):
        off = pl.multiple_of(b * hw, hw)
        xt = x_ref[pl.ds(off, hw), :]                                # (HW, C)
        kt = jnp.dot(xt, wkT_ref[...],
                     preferred_element_type=jnp.float32) + bk_ref[...]
        k_scr[pl.ds(off, hw), :] = kt.astype(jnp.bfloat16)
        return carry

    lax.fori_loop(0, group_b, k_body, 0, unroll=unroll)

    # ---- pass 2: stream scores one query image at a time -------------------
    # The (M, M) score matrix is never materialized: per query image we build
    # lane-major logits (1, HW_q) by a running max+sum over key images, do the
    # softmax in fp32 on the lanes, and fold the image's contribution to the
    # proto with a skinny MXU matvec reusing the already-loaded xq tile.
    def q_body(bq_i, acc):
        offq = pl.multiple_of(bq_i * hw, hw)
        xq = x_ref[pl.ds(offq, hw), :]                               # (HW, C) bf16
        q = (jnp.dot(xq, wqT_ref[...],
                     preferred_element_type=jnp.float32)
             + bq_ref[...]).astype(jnp.bfloat16)                     # (HW, C)

        def kimg_body(bp, lrow):
            offk = pl.multiple_of(bp * hw, hw)
            kt = k_scr[pl.ds(offk, hw), :]                           # (HW, C)
            # (HW_k, HW_q): contract channel dim of both operands (no transposes)
            s = lax.dot_general(kt, q,
                                dimension_numbers=(((1,), (1,)), ((), ())),
                                preferred_element_type=jnp.float32)
            # max over key spatial positions -> lane-major query logits
            return lrow + jnp.max(s, axis=0, keepdims=True)          # (1, HW_q)

        logits = lax.fori_loop(0, group_b, kimg_body,
                               jnp.zeros((1, hw), jnp.float32), unroll=unroll)

        # per-image softmax over HW (lanes), fp32
        logits = logits - jnp.max(logits, axis=-1, keepdims=True)
        e = jnp.exp(logits)
        wrow = (e / jnp.sum(e, axis=-1, keepdims=True)).astype(jnp.bfloat16)

        # weighted channel sum for this image: one skinny MXU matvec, fp32 acc
        return acc + jnp.dot(wrow, xq, preferred_element_type=jnp.float32)

    acc = lax.fori_loop(0, group_b, q_body,
                        jnp.zeros((1, c), jnp.float32), unroll=unroll)

    # proto = mean(conv6(x*w)) = mean(x*w) @ W6^T + b6   (linearity of conv6).
    y = acc * (1.0 / float(m))
    proto_ref[...] = (jnp.dot(y, w6T_ref[...],
                              preferred_element_type=jnp.float32) + b6_ref[...])


def _stage1_vmem_bytes(m, c, group_b, hw):
    del group_b, hw
    x_bytes = 2 * m * c * 2                                   # dbl-buffered bf16 x
    w_bytes = 2 * (2 * c * c * 2 + c * c * 4 + 3 * _round_up(c, 128) * 4)
    scr_bytes = m * c * 2                                     # bf16 K scratch
    out_bytes = 2 * _round_up(c, 128) * 4
    need = x_bytes + w_bytes + scr_bytes + out_bytes
    return int(min(56 * _MB, max(32 * _MB, int(need * 1.5))))


def all_att_protos(x_tok, params, *, n_groups, scale):
    """x_tok: (B, HW, C) activations -> protos: (n_groups, 1, C) fp32."""
    b, hw, c = x_tok.shape
    assert b % n_groups == 0
    group_b = b // n_groups
    m = group_b * hw
    # Flatten (image, token) in the wrapper: free in XLA (fuses with the
    # layout transpose) and avoids an in-kernel sublane relayout at odd HW.
    x_r = x_tok.reshape(n_groups, m, c).astype(jnp.bfloat16)

    qscale = scale / float(group_b)        # fold scale & key-image mean into Wq
    wqT = (params["wq"].T * qscale).astype(jnp.bfloat16)
    bq = (params["bq"] * qscale).astype(jnp.float32)[None, :]
    wkT = params["wk"].T.astype(jnp.bfloat16)
    bk = params["bk"].astype(jnp.float32)[None, :]
    w6T = params["w6"].T.astype(jnp.float32)
    b6 = params["b6"].astype(jnp.float32)[None, :]

    kernel = functools.partial(_allatt_proto_kernel, group_b=group_b, hw=hw)
    protos = pl.pallas_call(
        kernel,
        out_shape=jax.ShapeDtypeStruct((n_groups, 1, c), jnp.float32),
        grid_spec=pltpu.PrefetchScalarGridSpec(
            num_scalar_prefetch=0,
            grid=(n_groups,),
            in_specs=[
                pl.BlockSpec((None, m, c), lambda g: (g, 0, 0)),   # x tokens
                pl.BlockSpec((c, c), lambda g: (0, 0)),            # wqT (resident)
                pl.BlockSpec((1, c), lambda g: (0, 0)),            # bq
                pl.BlockSpec((c, c), lambda g: (0, 0)),            # wkT
                pl.BlockSpec((1, c), lambda g: (0, 0)),            # bk
                pl.BlockSpec((c, c), lambda g: (0, 0)),            # w6T
                pl.BlockSpec((1, c), lambda g: (0, 0)),            # b6
            ],
            out_specs=pl.BlockSpec((None, 1, c), lambda g: (g, 0, 0)),
            scratch_shapes=[pltpu.VMEM((m, c), jnp.bfloat16)],     # resident K
        ),
        compiler_params=pltpu.CompilerParams(
            dimension_semantics=("parallel",),
            vmem_limit_bytes=_stage1_vmem_bytes(m, c, group_b, hw)),
    )(x_r, wqT, bq, wkT, bk, w6T, b6)
    return protos


# ----------------------------------------------------------------------------
# Stage 2: proto weighting (fused weighted + neg, cdiv-tiled & pipelined)
# ----------------------------------------------------------------------------
def _coatt_weight_kernel(x_ref, pown_ref, poth_ref, w_ref, n_ref):
    xt = x_ref[...].astype(jnp.float32)
    w_ref[...] = (xt * pown_ref[...]).astype(w_ref.dtype)   # own-half proto
    n_ref[...] = (xt * poth_ref[...]).astype(n_ref.dtype)   # other-half proto


def _weight_eval_kernel(x_ref, p_ref, o_ref):
    o_ref[...] = (x_ref[...].astype(jnp.float32) * p_ref[...]).astype(o_ref.dtype)


def _row_tile(rows, max_tile=1024):
    """Fixed row tile (multiple of 8); ragged last block is padded by Pallas
    (safe: the kernel is purely element-wise)."""
    return max(8, _round_up(min(max_tile, rows), 8))


def _stage2_vmem_bytes(tile, c, n_streams):
    need = 2 * n_streams * tile * _round_up(c, 128) * 4 + 4 * _round_up(c, 128) * 4
    return int(min(56 * _MB, max(32 * _MB, int(need * 1.5))))


def coatt_weight_pair(x_tok, protos):
    """Training branch weighting.  x_tok: (B, HW, C), protos: (2, 1, C)."""
    b, hw, c = x_tok.shape
    half_m = (b // 2) * hw
    x_r = x_tok.reshape(2, half_m, c)
    tile = _row_tile(half_m)
    tiles = pl.cdiv(half_m, tile)
    out_sd = jax.ShapeDtypeStruct((2, half_m, c), x_r.dtype)

    weighted, neg = pl.pallas_call(
        _coatt_weight_kernel,
        out_shape=(out_sd, out_sd),
        grid=(2, tiles),
        in_specs=[
            pl.BlockSpec((None, tile, c), lambda g, t: (g, t, 0)),   # x rows
            pl.BlockSpec((None, 1, c), lambda g, t: (g, 0, 0)),      # own proto
            pl.BlockSpec((None, 1, c), lambda g, t: (1 - g, 0, 0)),  # other proto
        ],
        out_specs=(
            pl.BlockSpec((None, tile, c), lambda g, t: (g, t, 0)),
            pl.BlockSpec((None, tile, c), lambda g, t: (g, t, 0)),
        ),
        compiler_params=pltpu.CompilerParams(
            dimension_semantics=("parallel", "parallel"),
            vmem_limit_bytes=_stage2_vmem_bytes(tile, c, 3)),
    )(x_r, protos, protos)
    return weighted.reshape(b, hw, c), neg.reshape(b, hw, c)


def coatt_weight_single(x_tok, proto):
    """Eval branch weighting.  x_tok: (B, HW, C), proto: (1, C)."""
    b, hw, c = x_tok.shape
    m = b * hw
    x_r = x_tok.reshape(m, c)
    tile = _row_tile(m)
    tiles = pl.cdiv(m, tile)
    out = pl.pallas_call(
        _weight_eval_kernel,
        out_shape=jax.ShapeDtypeStruct((m, c), x_r.dtype),
        grid=(tiles,),
        in_specs=[pl.BlockSpec((tile, c), lambda t: (t, 0)),
                  pl.BlockSpec((1, c), lambda t: (0, 0))],
        out_specs=pl.BlockSpec((tile, c), lambda t: (t, 0)),
        compiler_params=pltpu.CompilerParams(
            dimension_semantics=("parallel",),
            vmem_limit_bytes=_stage2_vmem_bytes(tile, c, 2)),
    )(x_r, proto)
    return out.reshape(b, hw, c)


# ----------------------------------------------------------------------------
# CoAttLayer.forward (NCHW in / NCHW out, like the PyTorch module)
# ----------------------------------------------------------------------------
def coatt_forward(x5_nchw, params, *, training=True,
                  compute_dtype=jnp.bfloat16, channels_last_output=False):
    b, c, h, w = x5_nchw.shape
    scale = 1.0 / (c ** 0.5)
    # NCHW -> token-major (B, HW, C).  compute_dtype (bf16) halves all HBM
    # traffic; accumulations / softmax / proto math stay fp32 in the kernels.
    x_tok = jnp.transpose(x5_nchw, (0, 2, 3, 1)).reshape(b, h * w, c)
    x_tok = x_tok.astype(compute_dtype)

    def finish(t):
        t = t.reshape(-1, h, w, c)
        if channels_last_output:              # skip the extra transpose pass
            return t
        return jnp.transpose(t, (0, 3, 1, 2)).astype(x5_nchw.dtype)

    if training:
        protos = all_att_protos(x_tok, params, n_groups=2, scale=scale)  # (2,1,C)
        weighted, neg = coatt_weight_pair(x_tok, protos)
        return finish(weighted), finish(neg)
    protos = all_att_protos(x_tok, params, n_groups=1, scale=scale)      # (1,1,C)
    weighted = coatt_weight_single(x_tok, protos.reshape(1, c))
    return finish(weighted), None


# ----------------------------------------------------------------------------
# Deterministic parameter init (c2_msra_fill: kaiming-normal fan_out, zero bias)
# ----------------------------------------------------------------------------
def init_params(key, c):
    std = (2.0 / c) ** 0.5
    k1, k2, k3 = jax.random.split(key, 3)
    return dict(
        wq=jax.random.normal(k1, (c, c), jnp.float32) * std,   # (out_ch, in_ch)
        bq=jnp.zeros((c,), jnp.float32),
        wk=jax.random.normal(k2, (c, c), jnp.float32) * std,
        bk=jnp.zeros((c,), jnp.float32),
        w6=jax.random.normal(k3, (c, c), jnp.float32) * std,
        b6=jnp.zeros((c,), jnp.float32),
    )


# ----------------------------------------------------------------------------
# Pure-JAX reference (mirrors the PyTorch code exactly, NCHW, fp32)
# ----------------------------------------------------------------------------
def _ref_allatt(x, p, scale):
    b, c, h, w = x.shape

    def conv1x1(t, wgt, bias):
        return jnp.einsum("bchw,oc->bohw", t, wgt) + bias[None, :, None, None]

    q = conv1x1(x, p["wq"], p["bq"]).reshape(b, c, -1)
    q = jnp.transpose(q, (0, 2, 1)).reshape(-1, c)
    k = conv1x1(x, p["wk"], p["bk"]).reshape(b, c, -1)
    k = jnp.transpose(k, (1, 0, 2)).reshape(c, -1)
    s = q @ k
    s = s.reshape(b * h * w, b, h * w)
    s = jnp.max(s, axis=-1)
    s = jnp.mean(s, axis=-1)
    s = s.reshape(b, -1) * scale
    s = jax.nn.softmax(s, axis=-1)
    s = s.reshape(b, 1, h, w)
    return conv1x1(x * s, p["w6"], p["b6"])


def _ref_coatt(x, p, training=True):
    b, c, h, w = x.shape
    scale = 1.0 / (c ** 0.5)
    if training:
        half = b // 2
        x1, x2 = x[:half], x[half:]
        n1 = _ref_allatt(x1, p, scale)
        n2 = _ref_allatt(x2, p, scale)
        p1 = jnp.mean(n1, axis=(0, 2, 3)).reshape(1, c, 1, 1)
        p2 = jnp.mean(n2, axis=(0, 2, 3)).reshape(1, c, 1, 1)
        weighted = jnp.concatenate([x1 * p1, x2 * p2], axis=0)
        neg = jnp.concatenate([x1 * p2, x2 * p1], axis=0)
        return weighted, neg
    n = _ref_allatt(x, p, scale)
    pr = jnp.mean(n, axis=(0, 2, 3)).reshape(1, c, 1, 1)
    return x * pr, None


# ----------------------------------------------------------------------------
if __name__ == "__main__":
    B, C, H, W = 2, 32, 8, 8  # small shapes; input_channels=512 in the original
    key = jax.random.PRNGKey(0)
    k_x, k_p = jax.random.split(key)
    x5 = jax.random.normal(k_x, (B, C, H, W), jnp.float32)
    params = init_params(k_p, C)

    # training branch (module default): batch split in half + cross-proto neg.
    weighted_x5, neg_x5 = coatt_forward(x5, params, training=True)
    weighted_x5 = jax.block_until_ready(weighted_x5)
    neg_x5 = jax.block_until_ready(neg_x5)

    # eval branch (neg is None)
    weighted_eval, neg_eval = coatt_forward(x5, params, training=False)
    weighted_eval = jax.block_until_ready(weighted_eval)
    assert neg_eval is None

    # correctness check against a pure-JAX fp32 reference (bf16 activations
    # inside the kernels -> loose tolerance)
    ref_w, ref_n = _ref_coatt(x5, params, training=True)
    ref_we, _ = _ref_coatt(x5, params, training=False)
    assert jnp.allclose(weighted_x5, ref_w, rtol=3e-2, atol=3e-2)
    assert jnp.allclose(neg_x5, ref_n, rtol=3e-2, atol=3e-2)
    assert jnp.allclose(weighted_eval, ref_we, rtol=3e-2, atol=3e-2)

    print("KERNEL_OK")
</pallas_src>

<mosaic_0001>
module attributes {stable_mosaic.version = 11 : i64} {
  func.func @_allatt_proto_kernel(%arg0: i32, %arg1: memref<1x64x32xbf16, #tpu.memory_space<vmem>>, %arg2: memref<32x32xbf16, #tpu.memory_space<vmem>>, %arg3: memref<1x32xf32, #tpu.memory_space<vmem>>, %arg4: memref<32x32xbf16, #tpu.memory_space<vmem>>, %arg5: memref<1x32xf32, #tpu.memory_space<vmem>>, %arg6: memref<32x32xf32, #tpu.memory_space<vmem>>, %arg7: memref<1x32xf32, #tpu.memory_space<vmem>>, %arg8: memref<1x1x32xf32, #tpu.memory_space<vmem>>, %arg9: memref<64x32xbf16, #tpu.memory_space<vmem>>) attributes {dimension_semantics = [#tpu.dimension_semantics<parallel>], iteration_bounds = array<i64: 2>, scalar_prefetch = 0 : i64, scratch_operands = 1 : i64, tpu.core_type = #tpu.core_type<tc>, window_params = [{transform_indices = @transform_0, window_bounds = array<i64: 1, 64, 32>}, {pipeline_mode = #tpu.pipeline_mode<synchronous>, transform_indices = @transform_1, window_bounds = array<i64: 32, 32>}, {pipeline_mode = #tpu.pipeline_mode<synchronous>, transform_indices = @transform_2, window_bounds = array<i64: 1, 32>}, {pipeline_mode = #tpu.pipeline_mode<synchronous>, transform_indices = @transform_3, window_bounds = array<i64: 32, 32>}, {pipeline_mode = #tpu.pipeline_mode<synchronous>, transform_indices = @transform_4, window_bounds = array<i64: 1, 32>}, {pipeline_mode = #tpu.pipeline_mode<synchronous>, transform_indices = @transform_5, window_bounds = array<i64: 32, 32>}, {pipeline_mode = #tpu.pipeline_mode<synchronous>, transform_indices = @transform_6, window_bounds = array<i64: 1, 32>}, {transform_indices = @transform_7, window_bounds = array<i64: 1, 1, 32>}]} {
    %c0_i32 = arith.constant 0 : i32
    %c64_i32 = arith.constant 64 : i32
    %0 = arith.muli %c0_i32, %c64_i32 : i32
    %1 = tpu.assume_multiple %0, 64 : i32
    %c0 = arith.constant 0 : index
    %2 = arith.index_cast %1 : i32 to index
    %c0_0 = arith.constant 0 : index
    %3 = vector.load %arg1[%c0, %2, %c0_0] : memref<1x64x32xbf16, #tpu.memory_space<vmem>>, vector<1x64x32xbf16>
    %4 = vector.shape_cast %3 : vector<1x64x32xbf16> to vector<64x32xbf16>
    %c0_1 = arith.constant 0 : index
    %c0_2 = arith.constant 0 : index
    %5 = vector.load %arg4[%c0_1, %c0_2] : memref<32x32xbf16, #tpu.memory_space<vmem>>, vector<32x32xbf16>
    %cst = arith.constant dense<0.000000e+00> : vector<64x32xf32>
    %6 = tpu.matmul %4, %5, %cst {dimension_numbers = #tpu.dot_dimension_numbers<[1], [0], [0], [1], [0, 0, 1, 1], [], []>} : vector<64x32xbf16>, vector<32x32xbf16>, vector<64x32xf32> -> vector<64x32xf32>
    %c0_3 = arith.constant 0 : index
    %c0_4 = arith.constant 0 : index
    %7 = vector.load %arg5[%c0_3, %c0_4] : memref<1x32xf32, #tpu.memory_space<vmem>>, vector<1x32xf32>
    %8 = vector.broadcast %7 : vector<1x32xf32> to vector<64x32xf32>
    %9 = arith.addf %6, %8 : vector<64x32xf32>
    %10 = arith.truncf %9 : vector<64x32xf32> to vector<64x32xbf16>
    %11 = arith.index_cast %1 : i32 to index
    %c0_5 = arith.constant 0 : index
    %12 = vector.load %arg9[%11, %c0_5] : memref<64x32xbf16, #tpu.memory_space<vmem>>, vector<64x32xbf16>
    tpu.vector_store %arg9[%11, %c0_5], %10 {strides = array<i32>} : memref<64x32xbf16, #tpu.memory_space<vmem>>, vector<64x32xbf16>,
    %c1_i32 = arith.constant 1 : i32
    %cst_6 = arith.constant 0.000000e+00 : f32
    %13 = vector.broadcast %cst_6 : f32 to vector<1x32xf32>
    %c0_i32_7 = arith.constant 0 : i32
    %c64_i32_8 = arith.constant 64 : i32
    %14 = arith.muli %c0_i32_7, %c64_i32_8 : i32
    %15 = tpu.assume_multiple %14, 64 : i32
    %c0_9 = arith.constant 0 : index
    %16 = arith.index_cast %15 : i32 to index
    %c0_10 = arith.constant 0 : index
    %17 = vector.load %arg1[%c0_9, %16, %c0_10] : memref<1x64x32xbf16, #tpu.memory_space<vmem>>, vector<1x64x32xbf16>
    %18 = vector.shape_cast %17 : vector<1x64x32xbf16> to vector<64x32xbf16>
    %c0_11 = arith.constant 0 : index
    %c0_12 = arith.constant 0 : index
    %19 = vector.load %arg2[%c0_11, %c0_12] : memref<32x32xbf16, #tpu.memory_space<vmem>>, vector<32x32xbf16>
    %cst_13 = arith.constant dense<0.000000e+00> : vector<64x32xf32>
    %20 = tpu.matmul %18, %19, %cst_13 {dimension_numbers = #tpu.dot_dimension_numbers<[1], [0], [0], [1], [0, 0, 1, 1], [], []>} : vector<64x32xbf16>, vector<32x32xbf16>, vector<64x32xf32> -> vector<64x32xf32>
    %c0_14 = arith.constant 0 : index
    %c0_15 = arith.constant 0 : index
    %21 = vector.load %arg3[%c0_14, %c0_15] : memref<1x32xf32, #tpu.memory_space<vmem>>, vector<1x32xf32>
    %22 = vector.broadcast %21 : vector<1x32xf32> to vector<64x32xf32>
    %23 = arith.addf %20, %22 : vector<64x32xf32>
    %24 = arith.truncf %23 : vector<64x32xf32> to vector<64x32xbf16>
    %cst_16 = arith.constant 0.000000e+00 : f32
    %25 = vector.broadcast %cst_16 : f32 to vector<1x64xf32>
    %c0_i32_17 = arith.constant 0 : i32
    %c64_i32_18 = arith.constant 64 : i32
    %26 = arith.muli %c0_i32_17, %c64_i32_18 : i32
    %27 = tpu.assume_multiple %26, 64 : i32
    %28 = arith.index_cast %27 : i32 to index
    %c0_19 = arith.constant 0 : index
    %29 = vector.load %arg9[%28, %c0_19] : memref<64x32xbf16, #tpu.memory_space<vmem>>, vector<64x32xbf16>
    %cst_20 = arith.constant dense<0.000000e+00> : vector<64x64xf32>
    %30 = tpu.matmul %29, %24, %cst_20 {dimension_numbers = #tpu.dot_dimension_numbers<[1], [1], [0], [0], [0, 0, 1, 0], [], []>} : vector<64x32xbf16>, vector<64x32xbf16>, vector<64x64xf32> -> vector<64x64xf32>
    %cst_21 = arith.constant dense<0xFF800000> : vector<64xf32>
    %31 = vector.multi_reduction <maximumf>, %30, %cst_21 [0] : vector<64x64xf32> to vector<64xf32>
    %32 = vector.shape_cast %31 : vector<64xf32> to vector<1x64xf32>
    %33 = arith.addf %25, %32 : vector<1x64xf32>
    %c1_i32_22 = arith.constant 1 : i32
    %cst_23 = arith.constant dense<0xFF800000> : vector<1xf32>
    %34 = vector.multi_reduction <maximumf>, %33, %cst_23 [1] : vector<1x64xf32> to vector<1xf32>
    %35 = vector.shape_cast %34 : vector<1xf32> to vector<1x1xf32>
    %36 = vector.broadcast %35 : vector<1x1xf32> to vector<1x64xf32>
    %37 = arith.subf %33, %36 : vector<1x64xf32>
    %38 = math.exp %37 : vector<1x64xf32>
    %cst_24 = arith.constant dense<0.000000e+00> : vector<1xf32>
    %39 = vector.multi_reduction <add>, %38, %cst_24 [1] : vector<1x64xf32> to vector<1xf32>
    %40 = vector.shape_cast %39 : vector<1xf32> to vector<1x1xf32>
    %41 = vector.broadcast %40 : vector<1x1xf32> to vector<1x64xf32>
    %42 = arith.divf %38, %41 : vector<1x64xf32>
    %43 = arith.truncf %42 : vector<1x64xf32> to vector<1x64xbf16>
    %cst_25 = arith.constant dense<0.000000e+00> : vector<1x32xf32>
    %44 = tpu.matmul %43, %18, %cst_25 {dimension_numbers = #tpu.dot_dimension_numbers<[1], [0], [0], [1], [0, 0, 1, 1], [], []>} : vector<1x64xbf16>, vector<64x32xbf16>, vector<1x32xf32> -> vector<1x32xf32>
    %45 = arith.addf %13, %44 : vector<1x32xf32>
    %c1_i32_26 = arith.constant 1 : i32
    %cst_27 = arith.constant 1.562500e-02 : f32
    %46 = vector.broadcast %cst_27 : f32 to vector<1x32xf32>
    %47 = arith.mulf %45, %46 : vector<1x32xf32>
    %c0_28 = arith.constant 0 : index
    %c0_29 = arith.constant 0 : index
    %48 = vector.load %arg6[%c0_28, %c0_29] : memref<32x32xf32, #tpu.memory_space<vmem>>, vector<32x32xf32>
    %cst_30 = arith.constant dense<0.000000e+00> : vector<1x32xf32>
    %49 = tpu.matmul %47, %48, %cst_30 {dimension_numbers = #tpu.dot_dimension_numbers<[1], [0], [0], [1], [0, 0, 1, 1], [], []>} : vector<1x32xf32>, vector<32x32xf32>, vector<1x32xf32> -> vector<1x32xf32>
    %c0_31 = arith.constant 0 : index
    %c0_32 = arith.constant 0 : index
    %50 = vector.load %arg7[%c0_31, %c0_32] : memref<1x32xf32, #tpu.memory_space<vmem>>, vector<1x32xf32>
    %51 = arith.addf %49, %50 : vector<1x32xf32>
    %c0_33 = arith.constant 0 : index
    %c0_34 = arith.constant 0 : index
    %c0_35 = arith.constant 0 : index
    %52 = vector.load %arg8[%c0_33, %c0_34, %c0_35] : memref<1x1x32xf32, #tpu.memory_space<vmem>>, vector<1x1x32xf32>
    %53 = vector.shape_cast %52 : vector<1x1x32xf32> to vector<1x32xf32>
    %54 = vector.shape_cast %51 : vector<1x32xf32> to vector<1x1x32xf32>
    tpu.vector_store %arg8[%c0_33, %c0_34, %c0_35], %54 {strides = array<i32>} : memref<1x1x32xf32, #tpu.memory_space<vmem>>, vector<1x1x32xf32>,
    return
  }
  func.func @transform_0(%arg0: i32) -> (i32, i32, i32) {
    %c0_i32 = arith.constant 0 : i32
    %c0_i32_0 = arith.constant 0 : i32
    %c0_i32_1 = arith.constant 0 : i32
    return %arg0, %c0_i32, %c0_i32_0 : i32, i32, i32
  }
  func.func @transform_1(%arg0: i32) -> (i32, i32) {
    %c0_i32 = arith.constant 0 : i32
    %c0_i32_0 = arith.constant 0 : i32
    %c0_i32_1 = arith.constant 0 : i32
    return %c0_i32, %c0_i32_0 : i32, i32
  }
  func.func @transform_2(%arg0: i32) -> (i32, i32) {
    %c0_i32 = arith.constant 0 : i32
    %c0_i32_0 = arith.constant 0 : i32
    %c0_i32_1 = arith.constant 0 : i32
    return %c0_i32, %c0_i32_0 : i32, i32
  }
  func.func @transform_3(%arg0: i32) -> (i32, i32) {
    %c0_i32 = arith.constant 0 : i32
    %c0_i32_0 = arith.constant 0 : i32
    %c0_i32_1 = arith.constant 0 : i32
    return %c0_i32, %c0_i32_0 : i32, i32
  }
  func.func @transform_4(%arg0: i32) -> (i32, i32) {
    %c0_i32 = arith.constant 0 : i32
    %c0_i32_0 = arith.constant 0 : i32
    %c0_i32_1 = arith.constant 0 : i32
    return %c0_i32, %c0_i32_0 : i32, i32
  }
  func.func @transform_5(%arg0: i32) -> (i32, i32) {
    %c0_i32 = arith.constant 0 : i32
    %c0_i32_0 = arith.constant 0 : i32
    %c0_i32_1 = arith.constant 0 : i32
    return %c0_i32, %c0_i32_0 : i32, i32
  }
  func.func @transform_6(%arg0: i32) -> (i32, i32) {
    %c0_i32 = arith.constant 0 : i32
    %c0_i32_0 = arith.constant 0 : i32
    %c0_i32_1 = arith.constant 0 : i32
    return %c0_i32, %c0_i32_0 : i32, i32
  }
  func.func @transform_7(%arg0: i32) -> (i32, i32, i32) {
    %c0_i32 = arith.constant 0 : i32
    %c0_i32_0 = arith.constant 0 : i32
    %c0_i32_1 = arith.constant 0 : i32
    return %arg0, %c0_i32, %c0_i32_0 : i32, i32, i32
  }
}

</mosaic_0001>

<bundles_post_ra>
// kernel: tpu_custom_call.1
= control target key start
LH: loop header
LB: loop body
LE: loop exit
PB: predicated region body
PF: predicated region fallthrough
CT: control target
= control target key end

     0   :  { %12 = vsyncpa [#allocation4], 0  ;;  %s1362_s0 = inlined_call_operand.vmem [shape: bf16[2,64,32], index: 0, kind: input, shape index: {}]   ;;  %s1363_s1 = inlined_call_operand.vmem [shape: bf16[32,32], index: 1, kind: input, shape index: {}]   ;;  %s1364_s2 = inlined_call_operand.vmem [shape: f32[1,32], index: 2, kind: input, shape index: {}]   ;;  %s1365_s3 = inlined_call_operand.vmem [shape: bf16[32,32], index: 3, kind: input, shape index: {}]   ;;  %s1366_s4 = inlined_call_operand.vmem [shape: f32[1,32], index: 4, kind: input, shape index: {}]   ;;  %s1367_s5 = inlined_call_operand.vmem [shape: f32[32,32], index: 5, kind: input, shape index: {}]   ;;  %s1368_s6 = inlined_call_operand.vmem [shape: f32[1,32], index: 6, kind: input, shape index: {}]   ;;  %s1369_s7 = inlined_call_operand.hbm [shape: f32[2,1,32], index: 7, kind: output, shape index: {}]  }
   0x1   :  { %14 = vsyncpa [#allocation4 + $0x1], 0  ;;  %s1177_s24 = smov 0   ;;  %s1179_s25 = smov 0  }
   0x2   :  { %s1181_s26 = smov 0   ;;  %s1183_s27 = smov 0  }
   0x3 LB: > { %s1198_s28 = sadd.s32 4294967295, %s1131_s27   ;;  %s870_s29 = sadd.s32 4294967294, %s1131_s27   ;;  %s1131_s27 = sphi %s1183_s27, %s1375_s27   ;;  %s1127_s26 = sphi %s1181_s26, %s1374_s26   ;;  %s1123_s25 = sphi %s1179_s25, %s1373_s25   ;;  %s1119_s24 = sphi %s1177_s24, %s1372_s24  }
   0x4   : > { %s1202_s30 = sadd.s32 1, %s1131_s27   ;;  %s179_s8 = sadd.s32 1, %s1127_s26 }
   0x5   : > { %s176_s9 = ssub.s32 %s1131_s27, %s1202_s30  ;;  %p189_p0 = scmp.ne.s32.totalorder %s1127_s26, %s1123_s25 }
   0x6   : > { %p177_p1 = scmp.eq.s32.totalorder %s176_s9, 0  ;;  %p190_p2 = scmp.eq.s32.totalorder %s1198_s28, 1 }
   0x7   : > { %p195_p3 = scmp.ne.s32.totalorder %s1123_s25, %s1119_s24  ;;  %p196_p4 = scmp.eq.s32.totalorder %s870_s29, 1 }
   0x8   : > { %s1213_s10 = scalar_select %p177_p1, %s1127_s26, %s179_s8  }
   0x9   : > { %p1215_p5 = por %p190_p2, %p189_p0  ;;  %p1219_p6 = por %p196_p4, %p195_p3 }
   0xa   : > { %p873_p7 = scmp.ge.s32.totalorder %s1131_s27, 1  ;;  %p240_p8 = scmp.lt.s32.totalorder %s1131_s27, 3 }
   0xc   : > { %p241_p9 = pnand %p873_p7, %p240_p8 }
   0xd   : > { %v1053_v0 = vld [vmem:[%s1365_s3] sm:$0xff] (!%p241_p9)   ;;  %p271_p10 = scmp.lt.s32.totalorder (!%p241_p9), %s1198_s28, 1  ;;  %v1054_v1 = vld [vmem:[%s1365_s3 + $0x8] sm:$0xff] (!%p241_p9)   ;;  %vm328_vm0 = vcmask (!%p241_p9), 261120   ;;  %vm639_vm1 = vcmask (!%p241_p9), 523264   ;;  %vm1134_vm2 = vmmov (!%p241_p9), 0  }
   0xe   : > { %244 = sbr.rel (%p241_p9) target bundleno = 1294 (0x50e), region = 48  ;;  %938 = vmatprep.subr.bf16.mxu1 (!%p241_p9), %v1053_v0  ;;  %v1057_v2 = vld [vmem:[%s1363_s1] sm:$0xff] (!%p241_p9)   ;;  %v1060_v4 = vld [vmem:[%s1363_s1 + $0x8] sm:$0xff] (!%p241_p9)   ;;  %s269_s29 = sand.u32 (!%p241_p9), 1, %s1123_s25   ;;  %vm800_vm3 = vcmask (!%p241_p9), 253952  }
   0xf   : > { %939 = vmatpush3.bf16.msra.mxu1 (!%p241_p9), %v1053_v0  ;;  %v876_v13 = vld [vmem:[%s1366_s4] ss:$0 sm:$0xff] (!%p241_p9)  ;;  %s904_s13 = sshll.u32 (!%p241_p9), %s1198_s28, 4  ;;  %s270_s14 = scalar_lea.vmem (!%p241_p9), [#allocation3], %s269_s29 }
  0x10   : > { %940 = vmatprep.subr.bf16.mxu1 (!%p241_p9), %v1054_v1  ;;  %v887_v35 = vld [vmem:[%s1364_s2] ss:$0 sm:$0xff] (!%p241_p9)  ;;  %s815_s15 = sshll.u32 (!%p241_p9), %s270_s14, 4  ;;  %s803_s19 = scalar_lea.sflag (!%p241_p9), [#allocation4], %s269_s29  ;;  %s1322_s15 = int_to_ptr.vmem [resolvable:$true] %s815_s15 }
  0x11   : > { %s1069_s20 = scalar_lea.vmem (!%p241_p9), %s1322_s15, 16 }
  0x12   : > { %p1070_p11 = scmp.ne.s32.totalorder (!%p241_p9), %s1322_s15, %s1069_s20 }
  0x13   : > { %941 = vmatpush3.bf16.msra.mxu1 (!%p241_p9), %v1054_v1 }
  0x14   : > { %950 = vmatprep.subr.bf16.mxu1 (!%p241_p9), %v1057_v2  ;;  %p1071_p12 = pnand (!%p241_p9), %p1070_p11, %p1215_p5 }
  0x15   : > { %s272_s17 = scalar_select %p271_p10, %s1198_s28, 1 }
  0x16   : > { %p1072_p13 = pneg %p1071_p12  ;;  %s1136_s28 = smov [#allocation3]  }
  0x17   : > { %s907_s18 = sshll.u32 %s272_s17, 5  ;;  %s1073_s21 = sshll.u32 %s1136_s28, 4  ;;  %s1074_s21 = int_to_ptr.vmem [resolvable:$false] %s1073_s21 }
  0x18   : > { %s275_s23 = scalar_lea.vmem %s1362_s0, %s907_s18  ;;  %s1320_s18 = scalar_lea.hbm %s1369_s7, %s904_s13 }
  0x19   : > { %v1055_v3 = vld [vmem:[%s275_s23] sm:$0xff]   ;;  %v1056_v5 = vld [vmem:[%s275_s23 + $0x8] sm:$0xff]   ;;  %v1058_v6 = vld [vmem:[%s275_s23 + $0x10] sm:$0xff]   ;;  %s1075_s22 = scalar_lea.vmem %s1074_s21, 32  ;;  %p1076_p0 = scmp.lt.s32.totalorder %s1322_s15, %s1074_s21 }
  0x1a   : > { %942 = vmatprep.mubr.msk.bf16.mxu1 %vm328_vm0, %v1055_v3  ;;  %v1059_v7 = vld [vmem:[%s275_s23 + $0x18] sm:$0xff]   ;;  %v1245_v8 = vld [vmem:[%s275_s23] sm:$0xff]   ;;  %v1250_v9 = vld [vmem:[%s275_s23 + $0x8] sm:$0xff]   ;;  %p1077_p1 = scmp.lt.s32.totalorder %s1075_s22, %s1069_s20 }
  0x1b   : > { %943 = vmatmul.mubr.msk.bf16.vlgmr.msra.gmra.mrb[0].mxu1 %vm328_vm0, %v1056_v5  ;;  %v1252_v10 = vld [vmem:[%s275_s23 + $0x10] sm:$0xff]   ;;  %v1258_v11 = vld [vmem:[%s275_s23 + $0x18] sm:$0xff]  }
  0x1c   : > { %951 = vmatpush3.bf16.msra.mxu1 %v1057_v2  ;;  %946 = vmatprep.mubr.msk.bf16.mxu1 %vm328_vm0, %v1058_v6  ;;  %p1078_p2 = por %p1077_p1, %p1076_p0 }
  0x1d   : > { %952 = vmatprep.subr.bf16.mxu1 %v1060_v4 }
  0x1e   : > { %p1079_p3 = pnand %p1078_p2, %p1072_p13 }
  0x20   : > { %953 = vmatpush3.bf16.msra.mxu1 %v1060_v4 }
  0x23   : > { %947 = vmatmul.mubr.msk.bf16.gmra.mrb[4].mxu1 %vm328_vm0, %v1059_v7 }
  0x24   : > { %954 = vmatprep.mubr.msk.bf16.mxu1 %vm328_vm0, %v1245_v8 }
  0x2b   : > { %955 = vmatmul.mubr.msk.bf16.vlgmr.msra.gmra.mrb[8].mxu1 %vm328_vm0, %v1250_v9 }
  0x2c   : > { %958 = vmatprep.mubr.msk.bf16.mxu1 %vm328_vm0, %v1252_v10 }
  0x33   : > { %959 = vmatmul.mubr.msk.bf16.gmra.mrb[12].mxu1 %vm328_vm0, %v1258_v11 }
  0xee   : > { %v944_v12 = vpop.f32.mrb[0].mxu1 }
  0xef   : > { %v375_v14 = vpop.f32.mrb[1].mxu1  ;;  %v384_v16 = vadd.f32 %v944_v12, %v876_v13 }
  0xf0   : > { %v945_v15 = vpop.f32.mrb[2].mxu1  ;;  %v376_v19 = vadd.f32 %v876_v13, %v375_v14 }
  0xf1   : > { %v387_v17 = vadd.f32 %v945_v15, %v876_v13  ;;  %v378_v18 = vpop.f32.mrb[3].mxu1 }
  0xf2   : > { %v379_v20 = vadd.f32 %v876_v13, %v378_v18 }
  0xf3   : > { %v407_v21 = vpack.c.bf16 %v387_v17, %v384_v16 }
  0xf4   : > { %v406_v22 = vpack.c.bf16 %v379_v20, %v376_v19 }
  0xf5   : > { %411 = vst.msk [vmem:[#allocation2 + $0x8] sm:$0xff] %vm328_vm0, %v407_v21 }
  0xf6   : > { %410 = vst.msk [vmem:[#allocation2] sm:$0xff] %vm328_vm0, %v406_v22  ;;  %v948_v23 = vpop.f32.mrb[4].mxu1 }
  0xf7   : > { %v391_v24 = vpop.f32.mrb[5].mxu1  ;;  %v400_v26 = vadd.f32 %v948_v23, %v876_v13 }
  0xf8   : > { %v949_v25 = vpop.f32.mrb[6].mxu1  ;;  %v392_v29 = vadd.f32 %v876_v13, %v391_v24 }
  0xf9   : > { %v403_v27 = vadd.f32 %v949_v25, %v876_v13  ;;  %v394_v28 = vpop.f32.mrb[7].mxu1 }
  0xfa   : > { %v395_v30 = vadd.f32 %v876_v13, %v394_v28 }
  0xfb   : > { %v409_v31 = vpack.c.bf16 %v403_v27, %v400_v26 }
  0xfc   : > { %v408_v32 = vpack.c.bf16 %v395_v30, %v392_v29  ;;  %v547_v59 = vld [vmem:[#allocation2 + $0x8] sm:$0xff] }
  0xfd   : > { %413 = vst.msk [vmem:[#allocation2 + $0x18] sm:$0xff] %vm328_vm0, %v409_v31  ;;  %v546_v33 = vld [vmem:[#allocation2] sm:$0xff] }
  0xfe   : > { %412 = vst.msk [vmem:[#allocation2 + $0x10] sm:$0xff] %vm328_vm0, %v408_v32  ;;  %v956_v34 = vpop.f32.mrb[8].mxu1  ;;  %970 = vmatprep.mubr.msk.bf16.mxu0 %vm328_vm0, %v546_v33  ;;  %v1133_v32 = vmov 0.0  }
  0xff   : > { %v511_v36 = vpop.f32.mrb[9].mxu1  ;;  %v520_v38 = vadd.f32 %v956_v34, %v887_v35  ;;  %978 = vmatprep.subr.bf16.mxu1 %v1133_v32  ;;  %986 = vmatprep.mubr.msk.bf16.mxu1 %vm1134_vm2, %v1133_v32 }
 0x100   : > { %v957_v37 = vpop.f32.mrb[10].mxu1  ;;  %v512_v41 = vadd.f32 %v887_v35, %v511_v36  ;;  %979 = vmatpush3.bf16.msra.mxu1 %v1245_v8  ;;  %v1135_v8 = vmov 0.0|0.0  }
 0x101   : > { %v523_v39 = vadd.f32 %v957_v37, %v887_v35  ;;  %v514_v40 = vpop.f32.mrb[11].mxu1  ;;  %980 = vmatprep.subr.bf16.mxu1 %v1133_v32 }
 0x102   : > { %v515_v42 = vadd.f32 %v887_v35, %v514_v40 }
 0x103   : > { %v543_v43 = vpack.c.bf16 %v523_v39, %v520_v38 }
 0x104   : > { %v542_v44 = vpack.c.bf16 %v515_v42, %v512_v41  ;;  %v549_v61 = vld [vmem:[#allocation2 + $0x18] sm:$0xff]  ;;  %981 = vmatpush3.bf16.msra.mxu1 %v1250_v9  ;;  %v722_v9 = vld [vmem:[%s1367_s5] sm:$0xff]  ;;  %v724_v42 = vld [vmem:[%s1367_s5 + $0x10] sm:$0xff] }
 0x105   : > { %v566_v56 = vsel %vm328_vm0, %v543_v43, 0  ;;  %v548_v60 = vld [vmem:[#allocation2 + $0x10] sm:$0xff]  ;;  %982 = vmatprep.subr.bf16.mxu1 %v1133_v32 }
 0x106   : > { %1007 = vmatprep.subr.msk.bf16.mxu0 %vm328_vm0, %v542_v44  ;;  %v563_v45 = vsel %vm328_vm0, %v542_v44, 0  ;;  %v960_v46 = vpop.f32.mrb[12].mxu1 }
 0x107   : > { %963 = vmatpush3.bf16.xpose.msra.mxu0 %v563_v45  ;;  %v536_v47 = vadd.f32 %v960_v46, %v887_v35  ;;  %v527_v48 = vpop.f32.mrb[13].mxu1 }
 0x108   : > { %1008 = vmatprep.subr.msk.bf16.mxu0 %vm328_vm0, %v543_v43  ;;  %v528_v49 = vadd.f32 %v887_v35, %v527_v48  ;;  %v961_v50 = vpop.f32.mrb[14].mxu1  ;;  %983 = vmatpush3.bf16.msra.mxu1 %v1252_v10  ;;  %v723_v10 = vld [vmem:[%s1367_s5 + $0x8] sm:$0xff]  ;;  %v725_v43 = vld [vmem:[%s1367_s5 + $0x18] sm:$0xff] }
 0x109   : > { %v539_v51 = vadd.f32 %v961_v50, %v887_v35  ;;  %v530_v52 = vpop.f32.mrb[15].mxu1  ;;  %984 = vmatprep.subr.bf16.mxu1 %v1133_v32  ;;  %v1002_v40 = vpack.c.bf16 %v723_v10, %v722_v9  ;;  %v1005_v44 = vpack.c.bf16 %v725_v43, %v724_v42  ;;  %v726_v50 = vld [vmem:[%s1368_s6] sm:$0x1] }
 0x10a   : > { %v531_v53 = vadd.f32 %v887_v35, %v530_v52 }
 0x10b   : > { %v545_v54 = vpack.c.bf16 %v539_v51, %v536_v47 }
 0x10c   : > { %v544_v55 = vpack.c.bf16 %v531_v53, %v528_v49  ;;  %985 = vmatpush3.bf16.msra.mxu1 %v1258_v11 }
 0x10d   : > { %v572_v58 = vsel %vm328_vm0, %v545_v54, 0  ;;  %1001 = vmatprep.subr.bf16.mxu1 %v1135_v8 }
 0x10e   : > { %v569_v57 = vsel %vm328_vm0, %v544_v55, 0 }
 0x10f   : > { %965 = vmatpush3.bf16.xpose.msra.mxu0 %v566_v56 }
 0x110   : > { %1009 = vmatprep.subr.msk.bf16.mxu0 %vm328_vm0, %v544_v55 }
 0x117   : > { %967 = vmatpush3.bf16.xpose.msra.mxu0 %v569_v57 }
 0x118   : > { %1010 = vmatprep.subr.msk.bf16.mxu0 %vm328_vm0, %v545_v54 }
 0x11f   : > { %969 = vmatpush3.bf16.xpose.msra.mxu0 %v572_v58 }
 0x126   : > { %971 = vmatmul.mubr.msk.bf16.vlgmr.msra.gmra.mrb[0].mxu0 %vm328_vm0, %v547_v59 }
 0x127   : > { %974 = vmatprep.mubr.msk.bf16.mxu0 %vm328_vm0, %v548_v60 }
 0x12e   : > { %975 = vmatmul.mubr.msk.bf16.gmra.mrb[4].mxu0 %vm328_vm0, %v549_v61 }
 0x1f9   : > { %v972_v62 = vpop.f32.mrb[0].mxu0 }
 0x1fa   : > { %v608_v63 = vpop.f32.mrb[1].mxu0  ;;  %v642_v3 = vsel %vm639_vm1, %v972_v62, -inf }
 0x1fb   : > { %v973_v0 = vpop.f32.mrb[2].mxu0  ;;  %v640_v6 = vsel %vm639_vm1, %v608_v63, -inf }
 0x1fc   : > { %v611_v1 = vpop.f32.mrb[3].mxu0  ;;  %v643_v14 = vsel %vm639_vm1, %v973_v0, -inf }
 0x1fd   : > { %v641_v18 = vsel %vm639_vm1, %v611_v1, -inf }
 0x201   : > { %v976_v2 = vpop.f32.mrb[4].mxu0 }
 0x202   : > { %v648_v4 = vsel %vm639_vm1, %v976_v2, -inf  ;;  %v624_v5 = vpop.f32.mrb[5].mxu0 }
 0x203   : > { %v649_v7 = vmax.f32 %v642_v3, %v648_v4  ;;  %v644_v12 = vsel %vm639_vm1, %v624_v5, -inf  ;;  %v977_v13 = vpop.f32.mrb[6].mxu0 }
 0x204   : > { %v645_v15 = vmax.f32 %v640_v6, %v644_v12  ;;  %v650_v16 = vsel %vm639_vm1, %v977_v13, -inf  ;;  %v627_v17 = vpop.f32.mrb[7].mxu0 }
 0x205   : > { %v651_v19 = vmax.f32 %v643_v14, %v650_v16  ;;  %v646_v20 = vsel %vm639_vm1, %v627_v17, -inf }
 0x206   : > { %v647_v21 = vmax.f32 %v641_v18, %v646_v20 }
 0x207   : > { %v653_v22 = vmax.f32 %v649_v7, %v651_v19 }
 0x208   : > { %v652_v23 = vmax.f32 %v645_v15, %v647_v21 }
 0x20a   : > { %v654_v24 = vmax.f32 %v652_v23, %v653_v22 }
 0x20c   : > { %v655_v25 = vrot.slane %v654_v24, 4 }
 0x20e   : > { %v656_v26 = vmax.f32 %v654_v24, %v655_v25 }
 0x210   : > { %v657_v27 = vrot.slane %v656_v26, 2 }
 0x212   : > { %v658_v28 = vmax.f32 %v656_v26, %v657_v27 }
 0x214   : > { %v659_v29 = vrot.slane %v658_v28, 1 }
 0x216   : > { %v660_v30 = vmax.f32 %v658_v28, %v659_v29 }
 0x218   : > { %v662_v31 = vsel %vm639_vm1, %v660_v30, -inf }
 0x219   : > { %663 = vmax.xlane.f32.xlu0 %v662_v31 }
 0x2a6   : > { %v664_v33 = vpop.xlane.xlu0 %663 }
 0x2a7   : > { %v665_v34 = vsub.f32 %v660_v30, %v664_v33 }
 0x2a9   : > { %v666_v35 = vmul.f32 1.442695, %v665_v34 }
 0x2ab   : > { %1065 = vpow2.f32 %v666_v35 }
 0x2b5   : > { %v1066_v36 = vpop.eup %1065 }
 0x2b6   : > { %v668_v37 = vsel %vm639_vm1, %v1066_v36, 0.0 }
 0x2b7   : > { %669 = vadd.xlane.f32.xlu0 %v668_v37 }
 0x344   : > { %v670_v38 = vpop.xlane.xlu0 %669 }
 0x345   : > { %1067 = vrcp.f32 %v670_v38 }
 0x34f   : > { %v1068_v11 = vpop.eup %1067 }
 0x350   : > { %v672_v39 = vmul.f32 %v1068_v11, %v1066_v36 }
 0x352   : > { %v673_v41 = vpack.c.bf16 %v672_v39, %v672_v39 }
 0x354   : > { %987 = vmatmul.mubr.msk.bf16.vlgmr.msra.gmra.mrb[16].mxu1 %vm639_vm1, %v673_v41 }
 0x355   : > { %1003 = vmatpush3.bf16.msra.mxu1 %v1002_v40  ;;  %998 = vmatprep.mubr.msk.f32.mxu1 %vm1134_vm2, %v1133_v32 }
 0x356   : > { %1004 = vmatprep.subr.bf16.mxu1 %v1135_v8 }
 0x359   : > { %1006 = vmatpush3.bf16.msra.mxu1 %v1005_v44 }
 0x427   : > { %v715_v45 = vpop.f32.mrb[16].mxu1 }
 0x428   : > { %v721_v46 = vmul.f32 0.015625, %v715_v45  ;;  %v988_v47 = vpop.f32.mrb[17].mxu1 }
 0x429   : > { %v718_v48 = vpop.f32.mrb[18].mxu1 }
 0x42a   : > { %v989_v49 = vpop.f32.mrb[19].mxu1  ;;  %999 = vmatmul.mubr.msk.f32.vlgmr.msra.gmra.mrb[20].mxu1 %vm328_vm0, %v721_v46 }
 0x4fd   : > { %v796_v51 = vpop.f32.mrb[20].mxu1 }
 0x4fe   : > { %v797_v52 = vadd.f32 %v796_v51, %v726_v50  ;;  %v1000_v53 = vpop.f32.mrb[21].mxu1 }
 0x500   : > { %801 = vst.msk [vmem:[%s270_s14] sm:$0x1] %vm800_vm3, %v797_v52 }
 0x501   : > { %1082 = shalt.err (!%p1079_p3)
}
 0x502   : > { %s1083_s23 = scalar_lea.hbm %s1320_s18, 16  ;;  %s1087_s9 = scalar_lea.hbm %s1369_s7, 32 }
 0x503   : > { %p1084_p4 = scmp.ne.s32.totalorder %s1320_s18, %s1083_s23  ;;  %p1088_p9 = scmp.lt.u32.totalorder %s1320_s18, %s1369_s7 }
 0x504   : > { %p1089_p10 = scmp.lt.u32.totalorder %s1087_s9, %s1083_s23  ;;  %p1091_p12 = scmp.lt.u32.totalorder %s1083_s23, %s1320_s18 }
 0x505   : > { %p1085_p7 = pnand %p1084_p4, %p1215_p5 }
 0x506   : > { %p1090_p11 = por %p1089_p10, %p1088_p9 }
 0x507   : > { %p1086_p8 = pneg %p1085_p7 }
 0x508   : > { %p1092_p13 = por %p1091_p12, %p1090_p11 }
 0x50a   : > { %p1093_p0 = pnand %p1092_p13, %p1086_p8 }
 0x50c   : > { %1096 = shalt.err (!%p1093_p0)
}
 0x50d   : > { %1011 = dma.vmem_to_hbm [thread:$0]  (%p1215_p5), %s1322_s15, 16, %s1320_s18, %s803_s19  }
 0x50e PF: > { %p1017_p1 = scmp.ge.s32.totalorder %s1131_s27, 2  ;;  %s827_s16 = sand.u32 1, %s1119_s24  }
 0x50f   : > { %s828_s17 = scalar_lea.sflag [#allocation4], %s827_s16 }
 0x510   : > { %p1014_p2 = pnand %p1017_p1, %p1219_p6 }
 0x512   : > { %1114 = dma.done.wait (!%p1014_p2), %s828_s17, 16  }
 0x513   : > { %1116 = vsyncadd (!%p1014_p2), %s828_s17, 4294967280  ;;  %p17_p3 = scmp.ge.s32.totalorder %s1202_s30, 4   ;;  %s1372_s24 = smov %s1123_s25 }
 0x514   : > { %s1373_s25 = smov %s1127_s26  ;;  %s1374_s26 = smov %s1213_s10 }
 0x515   : > { %s1375_s27 = smov %s1202_s30  ;;  %19 = sbr.rel (!%p17_p3) target bundleno = 3 (0x3), region = 83 }
 0x51c   :  { %832 = vsyncpa [#allocation4], 1 }
 0x51d   :  { %834 = vsyncpa [#allocation4 + $0x1], 1 }

</bundles_post_ra>
